<compile_context>
chip_gen: v7x
topology: tpu7x:2x2x1
jax: 0.10.0
libtpu: 0.0.40
codegen_flags: <defaults>
</compile_context>

<pallas_src>
import functools

import jax
import jax.numpy as jnp
from jax.experimental import pallas as pl
from jax.experimental.pallas import tpu as pltpu


def _accuracy_kernel(outputs_ref, targets_ref, out_ref, *, n_total, num_inner):
    # outputs_ref: (tile_n, C) logits in their native dtype (f32/bf16/...), VMEM
    # targets_ref: (tile_n, 1) int32 class indices, VMEM
    # out_ref:     (1, 1, 1) float32 per-slice partial sum, VMEM-resident across the inner axis
    o = pl.program_id(0)      # parallel slice (one per TensorCore on v7x)
    j = pl.program_id(1)      # reduction step within the slice

    @pl.when(j == 0)
    def _init():
        out_ref[...] = jnp.zeros((1, 1, 1), jnp.float32)

    x = outputs_ref[...]                          # (tile_n, C)
    t = targets_ref[...]                          # (tile_n, 1) int32
    tn, c = x.shape

    # argmax along the class dim with first-occurrence tie-break:
    # row max (XLU lane reduce) + masked min of the column index.
    col = jax.lax.broadcasted_iota(jnp.int32, (tn, c), 1)
    row_max = jnp.max(x, axis=1, keepdims=True)                             # (tile_n, 1)
    pred = jnp.min(jnp.where(x == row_max, col, c), axis=1, keepdims=True)  # (tile_n, 1) i32

    # Mask rows past the true batch size (ragged last tile and fully-padded clamp tiles).
    row = jax.lax.broadcasted_iota(jnp.int32, (tn, 1), 0)
    tile_idx = o * num_inner + j
    valid = (tile_idx * tn + row) < n_total                                 # (tile_n, 1) bool

    correct = jnp.where(valid & (pred == t), 1.0, 0.0)                      # (tile_n, 1) f32
    out_ref[...] += jnp.sum(correct, axis=0, keepdims=True).reshape(1, 1, 1)


def _vmem_capacity_bytes():
    """Per-core VMEM capacity; conservative 64 MiB (v7x per-TC) if the query fails."""
    try:
        info = pltpu.get_tpu_info()
        cap = int(getattr(info, "vmem_capacity_bytes", 0) or 0)
        if cap > 0:
            return cap
    except Exception:
        pass
    return 64 * 1024 * 1024


def accuracy(outputs, targets, reduction="mean", *, tile_n=None, vmem_budget_bytes=None):
    """Pallas equivalent of the PyTorch Accuracy module's forward pass."""
    if reduction not in ("sum", "mean"):
        raise ValueError(reduction)

    n, c = outputs.shape
    itemsize = jnp.dtype(outputs.dtype).itemsize
    sub = {4: 8, 2: 16, 1: 32}.get(itemsize, 8)        # sublane multiple for the logits dtype

    # --- lane-padding-aware VMEM accounting (double-buffered input pipeline) ---
    c_pad = -(-c // 128) * 128                         # logits rows pad to 128 lanes in VMEM
    logits_row_bytes = c_pad * itemsize
    tgt_row_bytes = 128 * 4                            # (tile_n, 1) int32 pads to 128 lanes/row
    # TODO(synk): lane-dense (1, tile_n) targets blocks would cut targets VMEM/DMA ~16x but need
    # an in-kernel lane<->sublane relayout of pred/targets; kept the column layout for robustness.
    per_row = 2 * (logits_row_bytes + tgt_row_bytes)

    # --- generation-aware VMEM budget ---
    cap = _vmem_capacity_bytes()
    if vmem_budget_bytes is None:
        vmem_budget_bytes = min(max(cap // 3, 8 * 1024 * 1024), 48 * 1024 * 1024)
    budget = min(int(vmem_budget_bytes), cap - 8 * 1024 * 1024)

    # --- byte-based tile size: the biggest batch tile whose pipelined footprint fits ---
    if tile_n is None:
        tile_n = max(sub, min(budget // per_row, 32768))
        if tile_n >= n:
            tile_n = n                                 # single tile; block == full array dims
        else:
            tile_n = (tile_n // sub) * sub             # sublane-aligned partial tiles
    else:
        tile_n = int(min(tile_n, n))
        if tile_n < n and tile_n % sub != 0:
            raise ValueError(f"tile_n must be a multiple of {sub} when smaller than the batch")

    num_tiles = int(pl.cdiv(n, tile_n))
    num_outer = 2 if num_tiles >= 2 else 1             # v7x: one batch slice per TensorCore
    num_inner = int(pl.cdiv(num_tiles, num_outer))
    total_tiles = num_outer * num_inner
    last_blk = num_tiles - 1

    # Targets: int32 column layout, padded so every (possibly over-provisioned) tile is in-bounds.
    t1d = targets.astype(jnp.int32).reshape(n)
    pad = total_tiles * tile_n - n
    if pad:
        t1d = jnp.concatenate([t1d, jnp.zeros((pad,), jnp.int32)])
    targets2d = t1d.reshape(total_tiles * tile_n, 1)

    footprint = tile_n * per_row + 4096
    vmem_limit = int(min(cap, max(footprint + (8 << 20), 32 << 20)))

    kernel = functools.partial(_accuracy_kernel, n_total=n, num_inner=num_inner)
    partials = pl.pallas_call(
        kernel,
        out_shape=jax.ShapeDtypeStruct((num_outer, 1, 1), jnp.float32),
        grid=(num_outer, num_inner),
        in_specs=[
            # Clamp fully-out-of-range tile indices onto the last real block (their rows are
            # masked inside the kernel), so the large logits array needs no HBM padding.
            pl.BlockSpec((tile_n, c),
                         lambda o, j: (jnp.minimum(o * num_inner + j, last_blk), 0)),
            pl.BlockSpec((tile_n, 1), lambda o, j: (o * num_inner + j, 0)),
        ],
        out_specs=pl.BlockSpec((1, 1, 1), lambda o, j: (o, 0, 0)),
        compiler_params=pltpu.CompilerParams(
            dimension_semantics=("parallel", "arbitrary"),
            vmem_limit_bytes=vmem_limit,
        ),
        cost_estimate=pl.CostEstimate(
            flops=3 * n * c,
            transcendentals=0,
            bytes_accessed=n * c * itemsize + 4 * n + 4 * num_outer,
        ),
    )(outputs, targets2d)

    total_correct = jnp.sum(partials)                  # sum of per-slice partials
    if reduction == "mean":
        return total_correct / n                       # true N, not padded tile count
    return total_correct


if __name__ == "__main__":
    key = jax.random.PRNGKey(0)
    k1, k2, k3, k4, k5, k6 = jax.random.split(key, 6)

    # 1) MNIST-classifier-like shapes: batch=8, num_classes=10 (single-tile path).
    N, C = 8, 10
    outputs = jax.random.normal(k1, (N, C), dtype=jnp.float32)
    targets = jax.random.randint(k2, (N,), 0, C, dtype=jnp.int32)

    acc_mean = accuracy(outputs, targets, reduction="mean")
    acc_sum = accuracy(outputs, targets, reduction="sum")
    jax.block_until_ready((acc_mean, acc_sum))

    ref_correct = (jnp.argmax(outputs, axis=1) == targets).astype(jnp.float32)
    assert jnp.allclose(acc_mean, ref_correct.mean()), (acc_mean, ref_correct.mean())
    assert jnp.allclose(acc_sum, ref_correct.sum()), (acc_sum, ref_correct.sum())

    # bf16 logits go through the kernel without any wrapper-side cast.
    outputs_bf16 = outputs.astype(jnp.bfloat16)
    acc_bf16 = accuracy(outputs_bf16, targets, reduction="mean")
    ref_bf16 = (jnp.argmax(outputs_bf16, axis=1) == targets).astype(jnp.float32).mean()
    jax.block_until_ready(acc_bf16)
    assert jnp.allclose(acc_bf16, ref_bf16), (acc_bf16, ref_bf16)

    # 2) Multi-tile path: N=20, tile_n=8 -> 3 real tiles split across the 2-way parallel axis
    #    (2x2 tile slots, one clamped+masked, ragged last real tile masked by true N).
    N2, C2 = 20, 10
    outputs2 = jax.random.normal(k3, (N2, C2), dtype=jnp.float32)
    targets2 = jax.random.randint(k4, (N2,), 0, C2, dtype=jnp.int32)

    acc2_mean = accuracy(outputs2, targets2, reduction="mean", tile_n=8)
    acc2_sum = accuracy(outputs2, targets2, reduction="sum", tile_n=8)
    jax.block_until_ready((acc2_mean, acc2_sum))

    ref2 = (jnp.argmax(outputs2, axis=1) == targets2).astype(jnp.float32)
    assert jnp.allclose(acc2_mean, ref2.mean()), (acc2_mean, ref2.mean())
    assert jnp.allclose(acc2_sum, ref2.sum()), (acc2_sum, ref2.sum())

    # 3) Uneven tile split: N=100, C=12, tile_n=24 -> 5 real tiles, 2x3 slots (one clamped).
    N3, C3 = 100, 12
    outputs3 = jax.random.normal(k5, (N3, C3), dtype=jnp.float32)
    targets3 = jax.random.randint(k6, (N3,), 0, C3, dtype=jnp.int32)

    acc3_mean = accuracy(outputs3, targets3, reduction="mean", tile_n=24)
    acc3_sum = accuracy(outputs3, targets3, reduction="sum", tile_n=24)
    jax.block_until_ready((acc3_mean, acc3_sum))

    ref3 = (jnp.argmax(outputs3, axis=1) == targets3).astype(jnp.float32)
    assert jnp.allclose(acc3_mean, ref3.mean()), (acc3_mean, ref3.mean())
    assert jnp.allclose(acc3_sum, ref3.sum()), (acc3_sum, ref3.sum())

    print("KERNEL_OK")
</pallas_src>

<mosaic_0001>
module attributes {stable_mosaic.version = 11 : i64} {
  func.func @_accuracy_kernel(%arg0: i32, %arg1: i32, %arg2: memref<8x10xf32, #tpu.memory_space<vmem>>, %arg3: memref<8x1xi32, #tpu.memory_space<vmem>>, %arg4: memref<1x1x1xf32, #tpu.memory_space<vmem>>) attributes {dimension_semantics = [#tpu.dimension_semantics<parallel>, #tpu.dimension_semantics<arbitrary>], iteration_bounds = array<i64: 1, 1>, scalar_prefetch = 0 : i64, scratch_operands = 0 : i64, tpu.core_type = #tpu.core_type<tc>, window_params = [{transform_indices = @transform_0, window_bounds = array<i64: 8, 10>}, {transform_indices = @transform_1, window_bounds = array<i64: 8, 1>}, {transform_indices = @transform_2, window_bounds = array<i64: 1, 1, 1>}]} {
    %c0_i32 = arith.constant 0 : i32
    %0 = arith.cmpi eq, %arg1, %c0_i32 : i32
    %1 = arith.extui %0 : i1 to i32
    %c0_i32_0 = arith.constant 0 : i32
    %2 = arith.cmpi ne, %1, %c0_i32_0 : i32
    scf.if %2 {
      %cst_15 = arith.constant 0.000000e+00 : f32
      %33 = vector.broadcast %cst_15 : f32 to vector<1x1x1xf32>
      %c0_16 = arith.constant 0 : index
      %c0_17 = arith.constant 0 : index
      %c0_18 = arith.constant 0 : index
      %34 = vector.load %arg4[%c0_16, %c0_17, %c0_18] : memref<1x1x1xf32, #tpu.memory_space<vmem>>, vector<1x1x1xf32>
      tpu.vector_store %arg4[%c0_16, %c0_17, %c0_18], %33 {strides = array<i32>} : memref<1x1x1xf32, #tpu.memory_space<vmem>>, vector<1x1x1xf32>,
    } else {
    }
    %c0 = arith.constant 0 : index
    %c0_1 = arith.constant 0 : index
    %3 = vector.load %arg2[%c0, %c0_1] : memref<8x10xf32, #tpu.memory_space<vmem>>, vector<8x10xf32>
    %c0_2 = arith.constant 0 : index
    %c0_3 = arith.constant 0 : index
    %4 = vector.load %arg3[%c0_2, %c0_3] : memref<8x1xi32, #tpu.memory_space<vmem>>, vector<8x1xi32>
    %5 = tpu.iota {dimensions = array<i32: 1>} : vector<8x10xi32>
    %cst = arith.constant dense<0xFF800000> : vector<8xf32>
    %6 = vector.multi_reduction <maximumf>, %3, %cst [1] : vector<8x10xf32> to vector<8xf32>
    %7 = vector.shape_cast %6 : vector<8xf32> to vector<8x1xf32>
    %8 = vector.broadcast %7 : vector<8x1xf32> to vector<8x10xf32>
    %9 = arith.cmpf oeq, %3, %8 : vector<8x10xf32>
    %c10_i32 = arith.constant 10 : i32
    %10 = vector.broadcast %c10_i32 : i32 to vector<8x10xi32>
    %11 = arith.select %9, %5, %10 : vector<8x10xi1>, vector<8x10xi32>
    %cst_4 = arith.constant dense<2147483647> : vector<8xi32>
    %12 = vector.multi_reduction <minsi>, %11, %cst_4 [1] : vector<8x10xi32> to vector<8xi32>
    %13 = vector.shape_cast %12 : vector<8xi32> to vector<8x1xi32>
    %14 = tpu.iota {dimensions = array<i32: 0>} : vector<8x1xi32>
    %c1_i32 = arith.constant 1 : i32
    %15 = arith.muli %arg0, %c1_i32 : i32
    %16 = arith.addi %15, %arg1 : i32
    %c8_i32 = arith.constant 8 : i32
    %17 = arith.muli %16, %c8_i32 : i32
    %18 = vector.broadcast %17 : i32 to vector<8x1xi32>
    %19 = arith.addi %18, %14 : vector<8x1xi32>
    %c8_i32_5 = arith.constant 8 : i32
    %20 = vector.broadcast %c8_i32_5 : i32 to vector<8x1xi32>
    %21 = arith.cmpi slt, %19, %20 : vector<8x1xi32>
    %22 = arith.cmpi eq, %13, %4 : vector<8x1xi32>
    %23 = arith.andi %21, %22 : vector<8x1xi1>
    %cst_6 = arith.constant 1.000000e+00 : f32
    %cst_7 = arith.constant 0.000000e+00 : f32
    %24 = vector.broadcast %cst_6 : f32 to vector<8x1xf32>
    %25 = vector.broadcast %cst_7 : f32 to vector<8x1xf32>
    %26 = arith.select %23, %24, %25 : vector<8x1xi1>, vector<8x1xf32>
    %c0_8 = arith.constant 0 : index
    %c0_9 = arith.constant 0 : index
    %c0_10 = arith.constant 0 : index
    %27 = vector.load %arg4[%c0_8, %c0_9, %c0_10] : memref<1x1x1xf32, #tpu.memory_space<vmem>>, vector<1x1x1xf32>
    %cst_11 = arith.constant dense<0.000000e+00> : vector<1xf32>
    %28 = vector.multi_reduction <add>, %26, %cst_11 [0] : vector<8x1xf32> to vector<1xf32>
    %29 = vector.shape_cast %28 : vector<1xf32> to vector<1x1xf32>
    %30 = vector.shape_cast %29 : vector<1x1xf32> to vector<1x1x1xf32>
    %31 = arith.addf %27, %30 : vector<1x1x1xf32>
    %c0_12 = arith.constant 0 : index
    %c0_13 = arith.constant 0 : index
    %c0_14 = arith.constant 0 : index
    %32 = vector.load %arg4[%c0_12, %c0_13, %c0_14] : memref<1x1x1xf32, #tpu.memory_space<vmem>>, vector<1x1x1xf32>
    tpu.vector_store %arg4[%c0_12, %c0_13, %c0_14], %31 {strides = array<i32>} : memref<1x1x1xf32, #tpu.memory_space<vmem>>, vector<1x1x1xf32>,
    return
  }
  func.func @transform_0(%arg0: i32, %arg1: i32) -> (i32, i32) {
    %c1_i32 = arith.constant 1 : i32
    %0 = arith.muli %arg0, %c1_i32 : i32
    %1 = arith.addi %0, %arg1 : i32
    %c0_i32 = arith.constant 0 : i32
    %2 = arith.minsi %1, %c0_i32 : i32
    %c0_i32_0 = arith.constant 0 : i32
    %c0_i32_1 = arith.constant 0 : i32
    return %2, %c0_i32_0 : i32, i32
  }
  func.func @transform_1(%arg0: i32, %arg1: i32) -> (i32, i32) {
    %c1_i32 = arith.constant 1 : i32
    %0 = arith.muli %arg0, %c1_i32 : i32
    %1 = arith.addi %0, %arg1 : i32
    %c0_i32 = arith.constant 0 : i32
    %c0_i32_0 = arith.constant 0 : i32
    return %1, %c0_i32 : i32, i32
  }
  func.func @transform_2(%arg0: i32, %arg1: i32) -> (i32, i32, i32) {
    %c0_i32 = arith.constant 0 : i32
    %c0_i32_0 = arith.constant 0 : i32
    %c0_i32_1 = arith.constant 0 : i32
    return %arg0, %c0_i32, %c0_i32_0 : i32, i32, i32
  }
}

</mosaic_0001>

<bundles_post_ra>
// kernel: tpu_custom_call.1
= control target key start
LH: loop header
LB: loop body
LE: loop exit
PB: predicated region body
PF: predicated region fallthrough
CT: control target
= control target key end

     0   :  { %vm66_vm0 = vcmask 80896   ;;  %s198_s0 = inlined_call_operand.vmem [shape: f32[8,10], index: 0, kind: input, shape index: {}]   ;;  %s199_s1 = inlined_call_operand.vmem [shape: s32[8,1], index: 1, kind: input, shape index: {}]   ;;  %s200_s2 = inlined_call_operand.hbm [shape: f32[1,1,1], index: 2, kind: output, shape index: {}]  }
   0x1   :  { %v62_v0 = vld [vmem:[%s198_s0] sm:$0xff] }
   0x2   :  { %7 = vsyncpa [#allocation3], 0  ;;  %v67_v1 = vsel %vm66_vm0, %v62_v0, -inf  ;;  %v64_v2 = vlaneseq  ;;  %vm60_vm3 = vcmask 0   ;;  %v161_v13 = vmov 0.0   ;;  %v63_v18 = vld [vmem:[%s199_s1] sm:$0xff] }
   0x3   :  { %68 = vmax.xlane.f32.xlu0 %v67_v1  ;;  %61 = vst.msk [vmem:[#allocation2] sm:$0x1] %vm60_vm3, %v161_v13  ;;  %vm98_vm4 = vcmask 7168   ;;  %s162_s12 = smov [#allocation2]  }
   0x4   :  { %v65_v3 = vand.u32 127, %v64_v2  ;;  %s115_s13 = sshll.u32 %s162_s12, 4  ;;  %s116_s13 = int_to_ptr.vmem [resolvable:$true] %s115_s13 }
   0x5   :  { %s137_s14 = scalar_lea.vmem %s116_s13, 16  ;;  %s141_s1 = scalar_lea.vmem %s116_s13, 32 }
   0x6   :  { %p138_p0 = scmp.ne.s32.totalorder %s116_s13, %s137_s14  ;;  %p142_p1 = scmp.lt.s32.totalorder %s116_s13, %s116_s13 }
   0x7   :  { %p143_p2 = scmp.lt.s32.totalorder %s141_s1, %s137_s14 }
   0x9   :  { %p144_p3 = por %p143_p2, %p142_p1 }
   0xa   :  { %v97_v27 = vld [vmem:[#allocation2] sm:$0x1] }
   0xb   :  { %p145_p4 = pnand %p144_p3, %p138_p0 }
  0x90   :  { %v69_v4 = vpop.xlane.xlu0 %68 }
  0x91   :  { %vm70_vm1 = vcmp.eq.f32.partialorder %v62_v0, %v69_v4 }
  0x92   :  { %v71_v5 = vsel %vm70_vm1, %v65_v3, 10 }
  0x93   :  { %v72_v6 = vsel %vm66_vm0, %v71_v5, 2147483647 }
  0x94   :  { %v74_v7 = vshra.s32 %v72_v6, 16  ;;  %v73_v9 = vand.u32 65535, %v72_v6 }
  0x96   :  { %v76_v8 = vcvt.s32.f32 %v74_v7  ;;  %v75_v11 = vcvt.s32.f32 %v73_v9 }
  0x98   :  { %77 = vmin.xlane.f32.xlu0 %v76_v8 }
 0x125   :  { %v78_v10 = vpop.xlane.xlu0 %77 }
 0x126   :  { %vm79_vm2 = vcmp.eq.f32.partialorder %v76_v8, %v78_v10  ;;  %v84_v14 = vcvt.f32.s32 %v78_v10 }
 0x127   :  { %v80_v12 = vsel %vm79_vm2, %v75_v11, inf }
 0x128   :  { %81 = vmin.xlane.f32.xlu1 %v80_v12  ;;  %v85_v16 = vshll.u32 %v84_v14, 16 }
 0x1b5   :  { %v82_v15 = vpop.xlane.xlu1 %81 }
 0x1b6   :  { %v83_v17 = vcvt.f32.s32 %v82_v15 }
 0x1b8   :  { %v86_v19 = vadd.s32 %v85_v16, %v83_v17 }
 0x1ba   :  { %vm94_vm5 = vcmp.eq.s32.totalorder %v86_v19, %v63_v18 }
 0x1bb   :  { %v96_v20 = vsel %vm94_vm5, 1.0, %v161_v13 }
 0x1bc   :  { %v99_v21 = vsel %vm98_vm4, %v96_v20, 0.0 }
 0x1bd   :  { %v100_v22 = vrot.slane %v99_v21, 4 }
 0x1bf   :  { %v101_v23 = vadd.f32 %v100_v22, %v99_v21 }
 0x1c1   :  { %v102_v24 = vrot.slane %v101_v23, 2 }
 0x1c3   :  { %v103_v25 = vadd.f32 %v102_v24, %v101_v23 }
 0x1c5   :  { %v104_v26 = vrot.slane %v103_v25, 1 }
 0x1c7   :  { %v105_v28 = vadd.f32 %v104_v26, %v103_v25 }
 0x1c9   :  { %v106_v29 = vadd.f32 %v105_v28, %v97_v27 }
 0x1cb   :  { %108 = vst.msk [vmem:[#allocation2] sm:$0x1] %vm60_vm3, %v106_v29 }
 0x1cc   :  { %148 = shalt.err (!%p145_p4)
}
 0x1cd   :  { %s149_s17 = scalar_lea.hbm %s200_s2, 16 }
 0x1ce   :  { %p150_p5 = scmp.ne.s32.totalorder %s200_s2, %s149_s17  ;;  %p153_p6 = scmp.lt.u32.totalorder %s149_s17, %s200_s2 }
 0x1d0   :  { %p155_p7 = pnand %p153_p6, %p150_p5 }
 0x1d2   :  { %158 = shalt.err (!%p155_p7)
}
 0x1d3   :  { %118 = dma.vmem_to_hbm [thread:$0]  %s116_s13, 16, %s200_s2, [#allocation3]  }
 0x1d4   :  { %159 = dma.done.wait [#allocation3], 16  }
 0x1d5   :  { %160 = vsyncadd [#allocation3], 4294967280 }
 0x1d6   :  { %122 = vsyncpa [#allocation3], 1 }

</bundles_post_ra>
